<compile_context>
chip_gen: v5e
topology: v5e:2x2
jax: 0.10.0
libtpu: 0.0.40
codegen_flags: <defaults>
</compile_context>

<pallas_src>
from functools import partial
from typing import NamedTuple

import jax
import jax.numpy as jnp
from jax.experimental import pallas as pl
from jax.experimental.pallas import tpu as pltpu


class PaddedBatch(NamedTuple):
    payload: jax.Array          # (1, length, dim), float32
    seq_lens: jax.Array         # (1,), int32


def _identity_kernel(w_ref, o_ref):
    # The entire hot path of Model.forward(): output <- parameter.
    o_ref[...] = w_ref[...]


def _lane_dense_shape(L: int, D: int) -> tuple[int, int]:
    """Pick a 2-D view of the (L, D) payload whose last dim is lane-dense."""
    n = L * D
    if n % 128 == 0:
        # Full-width 128-lane rows -> unmasked vst.  (When n % 1024 == 0 this
        # is also a whole number of 8x128 vregs.)
        return (n // 128, 128)
    return (L, D)                   # fallback: still legal (block == full array)


# Whole-array (no-grid) path is used while input+output comfortably fit VMEM.
_SMALL_BYTES_LIMIT = 4 * 1024 * 1024      # 4 MiB payload -> single invocation
_TILE_BYTES_TARGET = 4 * 1024 * 1024      # ~4 MiB per block in the tiled path


@partial(jax.jit, static_argnums=(1,))
def prototypes_forward(weight: jax.Array, length: int) -> PaddedBatch:
    """Pallas equivalent of Model.forward()."""
    assert weight.ndim == 3 and weight.shape[0] == 1
    _, L, D = weight.shape

    rows, cols = _lane_dense_shape(L, D)
    w2d = weight.reshape(rows, cols)          # squeeze batch dim, lane-dense view
    nbytes = rows * cols * w2d.dtype.itemsize
    cost = pl.CostEstimate(flops=0, transcendentals=0, bytes_accessed=2 * nbytes)

    if nbytes <= _SMALL_BYTES_LIMIT or cols != 128 or rows % 8 != 0:
        # Tiny payload: single whole-array invocation, no grid, no pipeline.
        out2d = pl.pallas_call(
            _identity_kernel,
            out_shape=jax.ShapeDtypeStruct((rows, cols), weight.dtype),
            in_specs=[pl.BlockSpec(memory_space=pltpu.MemorySpace.VMEM)],
            out_specs=pl.BlockSpec(memory_space=pltpu.MemorySpace.VMEM),
            cost_estimate=cost,
        )(w2d)
    else:
        # Scaled-up prototype table: lane-dense row blocks (~4 MiB each,
        # multiple of 8 sublanes), 1-D "parallel" grid so the memory-bound
        # copy shards across TensorCores and double-buffers within the
        # scoped-VMEM budget on all of v5e/v6e/v7x.
        tr = max(8, min(rows, _TILE_BYTES_TARGET // (cols * w2d.dtype.itemsize)))
        tr -= tr % 8
        grid = (pl.cdiv(rows, tr),)
        out2d = pl.pallas_call(
            _identity_kernel,
            out_shape=jax.ShapeDtypeStruct((rows, cols), weight.dtype),
            grid_spec=pl.GridSpec(
                grid=grid,
                in_specs=[pl.BlockSpec((tr, cols), lambda i: (i, 0))],
                out_specs=pl.BlockSpec((tr, cols), lambda i: (i, 0)),
            ),
            compiler_params=pltpu.CompilerParams(
                dimension_semantics=("parallel",)),
            cost_estimate=cost,
        )(w2d)

    payload = out2d.reshape(1, L, D)
    # Static `length` -> constant-folded under jit, no per-call host transfer.
    seq_lens = jnp.full((1,), length, dtype=jnp.int32)
    return PaddedBatch(payload=payload, seq_lens=seq_lens)


if __name__ == "__main__":
    # Small shapes consistent with the module: length=8 (seq), dim=32 (hidden).
    length, dim = 8, 32

    # Deterministic parameter init, matching torch.randn(1, length, dim).
    key = jax.random.PRNGKey(0)
    weight = jax.random.normal(key, (1, length, dim), dtype=jnp.float32)

    out = prototypes_forward(weight, length)
    jax.block_until_ready(out.payload)
    jax.block_until_ready(out.seq_lens)

    # Sanity checks: identity forward + correct lengths.
    assert out.payload.shape == (1, length, dim)
    assert out.payload.dtype == weight.dtype
    assert bool(jnp.allclose(out.payload, weight))
    assert out.seq_lens.shape == (1,) and int(out.seq_lens[0]) == length

    print("KERNEL_OK")
</pallas_src>

<mosaic_0001>
module attributes {stable_mosaic.version = 11 : i64} {
  func.func @_identity_kernel(%arg0: memref<2x128xf32, #tpu.memory_space<vmem>>, %arg1: memref<2x128xf32, #tpu.memory_space<vmem>>) attributes {dimension_semantics = [], scalar_prefetch = 0 : i64, scratch_operands = 0 : i64, tpu.core_type = #tpu.core_type<tc>} {
    %c0 = arith.constant 0 : index
    %c0_0 = arith.constant 0 : index
    %0 = vector.load %arg0[%c0, %c0_0] : memref<2x128xf32, #tpu.memory_space<vmem>>, vector<2x128xf32>
    %c0_1 = arith.constant 0 : index
    %c0_2 = arith.constant 0 : index
    %1 = vector.load %arg1[%c0_1, %c0_2] : memref<2x128xf32, #tpu.memory_space<vmem>>, vector<2x128xf32>
    tpu.vector_store %arg1[%c0_1, %c0_2], %0 {strides = array<i32>} : memref<2x128xf32, #tpu.memory_space<vmem>>, vector<2x128xf32>,
    return
  }
}

</mosaic_0001>

<bundles_post_ra>
// kernel: prototypes_forward.1
= control target key start
LH: loop header
LB: loop body
LE: loop exit
PB: predicated region body
PF: predicated region fallthrough
CT: control target
= control target key end

     0   :  { %s30_s0 = inlined_call_operand.vmem [shape: f32[2,128], index: 0, kind: input, shape index: {}]   ;;  %s31_s1 = inlined_call_operand.vmem [shape: f32[2,128], index: 1, kind: output, shape index: {}]  }
   0x1   :  { %v8_v0 = vld [vmem:[%s30_s0] sm:$0x3] }
   0x2   :  { %9 = vst [vmem:[%s31_s1] sm:$0x3] %v8_v0 }

</bundles_post_ra>
